<compile_context>
chip_gen: v6e
topology: v6e:2x2x1
jax: 0.10.0
libtpu: 0.0.40
codegen_flags: <defaults>
</compile_context>

<pallas_src>
import functools

import jax
import jax.numpy as jnp
from jax.experimental import pallas as pl
from jax.experimental.pallas import tpu as pltpu

_MIB = 1024 * 1024


def _round_up(x, m):
    return (x + m - 1) // m * m


@functools.lru_cache(maxsize=1)
def _vmem_budget_bytes():
    """Returns (budget, physical) VMEM bytes for this generation.

    Budget is ~70% of per-core VMEM capacity (≈44 MiB on v7x, ≈90 MiB on v5e/v6e).
    Falls back to a conservative 64 MiB physical (v7x) if the query fails.
    """
    cap = 64 * _MIB
    try:
        cap = int(getattr(pltpu.get_tpu_info(), "vmem_capacity_bytes", cap))
    except Exception:
        pass
    return int(0.70 * cap), cap


def _feature_resizer_kernel(x_ref, w_ref, p_ref, o_ref, *, eps, c2, do_ln):
    # x_ref: (TM, C1)   input rows, native dtype (feeds the MXU directly)
    # w_ref: (C1, C2p)  weight pre-transposed to (in, out), zero-padded along out
    # p_ref: (4,  C2p)  f32 [bias; gamma; beta; valid-lane mask], zero-padded
    # o_ref: (TM, C2p)  lane-dense output tile (C2p multiple of 128)
    p = p_ref[...]

    # Linear: MXU matmul with f32 accumulation.
    y = jnp.dot(x_ref[...], w_ref[...], preferred_element_type=jnp.float32)
    y = y + p[0:1, :]  # bias; padded columns stay exactly 0

    if do_ln:
        c2_pad = y.shape[-1]
        inv_c2 = jnp.float32(1.0 / c2)
        # Padded columns of y are exactly 0 (zero weight columns + zero bias),
        # so the sum over C2p equals the sum over the real C2.
        mean = jnp.sum(y, axis=-1, keepdims=True) * inv_c2
        centered = y - mean
        if c2_pad > c2:
            # Zero the padded lanes (one VPU multiply) so the variance is exact.
            centered = centered * p[3:4, :]
        var = jnp.sum(centered * centered, axis=-1, keepdims=True) * inv_c2
        y = centered * jax.lax.rsqrt(var + eps)   # rsqrt -> EUP slot (free filler)
        y = y * p[1:2, :] + p[2:3, :]             # gamma/beta (padded cols -> 0)

    # Dropout: eval-mode identity.
    o_ref[...] = y.astype(o_ref.dtype)


def prepare_feature_resizer_params(weight, bias, gamma, beta):
    """One-time parameter prep (hoist out of the per-call path when calling repeatedly).

    weight: (C2, C1) [PyTorch nn.Linear layout]; bias/gamma/beta: (C2,).
    Returns (w_t, params) with w_t: (C1, C2p) and params: (4, C2p) f32.
    """
    C2 = weight.shape[0]
    C2p = _round_up(C2, 128)
    pad = C2p - C2
    w_t = weight.T  # (C1, C2)
    if pad:
        w_t = jnp.pad(w_t, ((0, 0), (0, pad)))
    mask = (jnp.arange(C2p) < C2).astype(jnp.float32)
    params = jnp.stack(
        [
            jnp.pad(bias.astype(jnp.float32), (0, pad)),
            jnp.pad(gamma.astype(jnp.float32), (0, pad)),
            jnp.pad(beta.astype(jnp.float32), (0, pad)),
            mask,
        ],
        axis=0,
    )  # (4, C2p)
    return w_t, params


def feature_resizer_apply(x, w_t, params, c2, *, eps=1e-12, do_ln=True,
                          row_tile=None, interpret=False):
    """Apply the fused Linear+LN kernel using pre-prepared (w_t, params)."""
    orig_shape = x.shape
    C1 = orig_shape[-1]
    C2p = w_t.shape[1]
    N = 1
    for d in orig_shape[:-1]:
        N *= d
    x2d = x.reshape(N, C1)

    bx = jnp.dtype(x.dtype).itemsize
    bw = jnp.dtype(w_t.dtype).itemsize
    # Minimum sublane tile for the input dtype (f32: 8, bf16: 16, int8/fp8: 32).
    sub = {4: 8, 2: 16, 1: 32}.get(bx, 8)

    def _footprint(tm):
        # double-buffered x/out tiles + constant operands + f32 LN intermediates.
        return (2 * tm * C1 * bx
                + 2 * tm * C2p * bx
                + 2 * C1 * C2p * bw
                + 2 * 4 * C2p * 4
                + 3 * tm * C2p * 4)

    budget, physical = _vmem_budget_bytes()

    # Row tile: grow up to 2048 rows (amortizes ~0.35 us/step), clamped to the
    # problem size, rounded to the dtype sublane multiple, shrunk to fit VMEM.
    if row_tile is None:
        row_tile = min(2048, _round_up(N, sub))
    row_tile = max(sub, _round_up(row_tile, sub))
    while row_tile > sub and _footprint(row_tile) > budget:
        row_tile = max(sub, _round_up(row_tile // 2, sub))
    # Megacore (v7x has 2 TensorCores): keep >=2 grid steps when there is enough work
    # so dimension_semantics=("parallel",) actually shards rows across both cores.
    if N >= 128 and pl.cdiv(N, row_tile) < 2:
        row_tile = max(sub, _round_up(pl.cdiv(N, 2), sub))

    # No host-side row padding: Pallas masks the partial last block; rows past N are
    # never written to the (N, C2p) output.
    grid = (pl.cdiv(N, row_tile),)

    kernel = functools.partial(_feature_resizer_kernel, eps=eps, c2=c2, do_ln=do_ln)

    cost = pl.CostEstimate(
        flops=2 * N * C1 * c2,
        transcendentals=N,  # one rsqrt per row
        bytes_accessed=bx * N * C1 + bw * C1 * C2p + bx * N * C2p,
    )

    est = _footprint(row_tile)
    # Scoped VMEM limit: enough for the working set, never above ~90% of physical VMEM
    # (v7x is only 64 MiB/TC; v5e/v6e have 128 MiB).
    vmem_limit = int(min(max(est + 8 * _MIB, 32 * _MIB), 0.90 * physical))

    out2d = pl.pallas_call(
        kernel,
        out_shape=jax.ShapeDtypeStruct((N, C2p), x.dtype),
        grid_spec=pltpu.PrefetchScalarGridSpec(
            num_scalar_prefetch=0,
            grid=grid,
            in_specs=[
                # x rows: full-extent last dim (== C1), so no padded copy of x is needed.
                pl.BlockSpec((row_tile, C1), lambda i: (i, 0)),
                # Constant operands (same block every step -> fetched once).
                pl.BlockSpec((C1, C2p), lambda i: (0, 0)),
                pl.BlockSpec((4, C2p), lambda i: (0, 0)),
            ],
            out_specs=pl.BlockSpec((row_tile, C2p), lambda i: (i, 0)),
        ),
        compiler_params=pltpu.CompilerParams(
            dimension_semantics=("parallel",),
            vmem_limit_bytes=vmem_limit,
        ),
        cost_estimate=cost,
        interpret=interpret,
    )(x2d, w_t, params)

    if C2p != c2:
        out2d = out2d[:, :c2]
    return out2d.reshape(*orig_shape[:-1], c2)


def feature_resizer(x, weight, bias, gamma, beta, *, eps=1e-12, do_ln=True,
                    row_tile=None, interpret=False):
    """Convenience wrapper. x: (..., C1); weight: (C2, C1); bias/gamma/beta: (C2,).

    For repeated calls with the same weights, call prepare_feature_resizer_params()
    once and use feature_resizer_apply() directly (or jit the whole thing) so the
    transpose/pad/stack of the parameters is hoisted out of the hot path.
    """
    w_t, params = prepare_feature_resizer_params(weight, bias, gamma, beta)
    return feature_resizer_apply(x, w_t, params, weight.shape[0],
                                 eps=eps, do_ln=do_ln,
                                 row_tile=row_tile, interpret=interpret)


def _reference(x, weight, bias, gamma, beta, eps=1e-12):
    y = jnp.einsum("bsc,oc->bso", x, weight) + bias
    mean = jnp.mean(y, axis=-1, keepdims=True)
    var = jnp.mean((y - mean) ** 2, axis=-1, keepdims=True)
    y = (y - mean) / jnp.sqrt(var + eps)
    return y * gamma + beta


if __name__ == "__main__":
    # Module config: input_feat_size=C1, output_feat_size=C2, dropout=0.1 (eval -> identity)
    B, S, C1, C2 = 2, 8, 32, 64

    key = jax.random.PRNGKey(0)
    kx, kw, kb, kg, kbeta = jax.random.split(key, 5)

    x = jax.random.normal(kx, (B, S, C1), dtype=jnp.float32)
    # nn.Linear(C1, C2): weight (C2, C1), bias (C2,)
    weight = jax.random.normal(kw, (C2, C1), dtype=jnp.float32) * (1.0 / jnp.sqrt(C1))
    bias = jax.random.normal(kb, (C2,), dtype=jnp.float32) * 0.01
    # nn.LayerNorm(C2): gamma ~1, beta ~0 (perturbed for a non-trivial test)
    gamma = 1.0 + 0.1 * jax.random.normal(kg, (C2,), dtype=jnp.float32)
    beta = 0.1 * jax.random.normal(kbeta, (C2,), dtype=jnp.float32)

    out = feature_resizer(x, weight, bias, gamma, beta)
    out = jax.block_until_ready(out)

    ref = _reference(x, weight, bias, gamma, beta)
    assert out.shape == (B, S, C2), out.shape
    assert jnp.allclose(out, ref, atol=1e-4, rtol=1e-4), float(jnp.max(jnp.abs(out - ref)))

    print("KERNEL_OK")
</pallas_src>

<mosaic_0001>
module attributes {stable_mosaic.version = 11 : i64} {
  func.func @_feature_resizer_kernel(%arg0: i32, %arg1: memref<16x32xf32, #tpu.memory_space<vmem>>, %arg2: memref<32x128xf32, #tpu.memory_space<vmem>>, %arg3: memref<4x128xf32, #tpu.memory_space<vmem>>, %arg4: memref<16x128xf32, #tpu.memory_space<vmem>>) attributes {dimension_semantics = [#tpu.dimension_semantics<parallel>], iteration_bounds = array<i64: 1>, scalar_prefetch = 0 : i64, scratch_operands = 0 : i64, tpu.core_type = #tpu.core_type<tc>, window_params = [{transform_indices = @transform_0, window_bounds = array<i64: 16, 32>}, {pipeline_mode = #tpu.pipeline_mode<synchronous>, transform_indices = @transform_1, window_bounds = array<i64: 32, 128>}, {pipeline_mode = #tpu.pipeline_mode<synchronous>, transform_indices = @transform_2, window_bounds = array<i64: 4, 128>}, {transform_indices = @transform_3, window_bounds = array<i64: 16, 128>}]} {
    %c0 = arith.constant 0 : index
    %c0_0 = arith.constant 0 : index
    %0 = vector.load %arg3[%c0, %c0_0] : memref<4x128xf32, #tpu.memory_space<vmem>>, vector<4x128xf32>
    %c0_1 = arith.constant 0 : index
    %c0_2 = arith.constant 0 : index
    %1 = vector.load %arg1[%c0_1, %c0_2] : memref<16x32xf32, #tpu.memory_space<vmem>>, vector<16x32xf32>
    %c0_3 = arith.constant 0 : index
    %c0_4 = arith.constant 0 : index
    %2 = vector.load %arg2[%c0_3, %c0_4] : memref<32x128xf32, #tpu.memory_space<vmem>>, vector<32x128xf32>
    %cst = arith.constant dense<0.000000e+00> : vector<16x128xf32>
    %3 = tpu.matmul %1, %2, %cst {dimension_numbers = #tpu.dot_dimension_numbers<[1], [0], [0], [1], [0, 0, 1, 1], [], []>} : vector<16x32xf32>, vector<32x128xf32>, vector<16x128xf32> -> vector<16x128xf32>
    %4 = vector.extract_strided_slice %0 {offsets = [0, 0], sizes = [1, 128], strides = [1, 1]} : vector<4x128xf32> to vector<1x128xf32>
    %5 = vector.broadcast %4 : vector<1x128xf32> to vector<16x128xf32>
    %6 = arith.addf %3, %5 : vector<16x128xf32>
    %cst_5 = arith.constant dense<0.000000e+00> : vector<16xf32>
    %7 = vector.multi_reduction <add>, %6, %cst_5 [1] : vector<16x128xf32> to vector<16xf32>
    %8 = vector.shape_cast %7 : vector<16xf32> to vector<16x1xf32>
    %cst_6 = arith.constant 1.562500e-02 : f32
    %9 = vector.broadcast %cst_6 : f32 to vector<16x1xf32>
    %10 = arith.mulf %8, %9 : vector<16x1xf32>
    %11 = vector.broadcast %10 : vector<16x1xf32> to vector<16x128xf32>
    %12 = arith.subf %6, %11 : vector<16x128xf32>
    %13 = vector.extract_strided_slice %0 {offsets = [3, 0], sizes = [1, 128], strides = [1, 1]} : vector<4x128xf32> to vector<1x128xf32>
    %14 = vector.broadcast %13 : vector<1x128xf32> to vector<16x128xf32>
    %15 = arith.mulf %12, %14 : vector<16x128xf32>
    %16 = arith.mulf %15, %15 : vector<16x128xf32>
    %cst_7 = arith.constant dense<0.000000e+00> : vector<16xf32>
    %17 = vector.multi_reduction <add>, %16, %cst_7 [1] : vector<16x128xf32> to vector<16xf32>
    %18 = vector.shape_cast %17 : vector<16xf32> to vector<16x1xf32>
    %cst_8 = arith.constant 1.562500e-02 : f32
    %19 = vector.broadcast %cst_8 : f32 to vector<16x1xf32>
    %20 = arith.mulf %18, %19 : vector<16x1xf32>
    %cst_9 = arith.constant 9.99999996E-13 : f32
    %21 = vector.broadcast %cst_9 : f32 to vector<16x1xf32>
    %22 = arith.addf %20, %21 : vector<16x1xf32>
    %23 = math.rsqrt %22 : vector<16x1xf32>
    %24 = vector.broadcast %23 : vector<16x1xf32> to vector<16x128xf32>
    %25 = arith.mulf %15, %24 : vector<16x128xf32>
    %26 = vector.extract_strided_slice %0 {offsets = [1, 0], sizes = [1, 128], strides = [1, 1]} : vector<4x128xf32> to vector<1x128xf32>
    %27 = vector.broadcast %26 : vector<1x128xf32> to vector<16x128xf32>
    %28 = arith.mulf %25, %27 : vector<16x128xf32>
    %29 = vector.extract_strided_slice %0 {offsets = [2, 0], sizes = [1, 128], strides = [1, 1]} : vector<4x128xf32> to vector<1x128xf32>
    %30 = vector.broadcast %29 : vector<1x128xf32> to vector<16x128xf32>
    %31 = arith.addf %28, %30 : vector<16x128xf32>
    %c0_10 = arith.constant 0 : index
    %c0_11 = arith.constant 0 : index
    %32 = vector.load %arg4[%c0_10, %c0_11] : memref<16x128xf32, #tpu.memory_space<vmem>>, vector<16x128xf32>
    tpu.vector_store %arg4[%c0_10, %c0_11], %31 {strides = array<i32>} : memref<16x128xf32, #tpu.memory_space<vmem>>, vector<16x128xf32>,
    return
  }
  func.func @transform_0(%arg0: i32) -> (i32, i32) {
    %c0_i32 = arith.constant 0 : i32
    %c0_i32_0 = arith.constant 0 : i32
    return %arg0, %c0_i32 : i32, i32
  }
  func.func @transform_1(%arg0: i32) -> (i32, i32) {
    %c0_i32 = arith.constant 0 : i32
    %c0_i32_0 = arith.constant 0 : i32
    %c0_i32_1 = arith.constant 0 : i32
    return %c0_i32, %c0_i32_0 : i32, i32
  }
  func.func @transform_2(%arg0: i32) -> (i32, i32) {
    %c0_i32 = arith.constant 0 : i32
    %c0_i32_0 = arith.constant 0 : i32
    %c0_i32_1 = arith.constant 0 : i32
    return %c0_i32, %c0_i32_0 : i32, i32
  }
  func.func @transform_3(%arg0: i32) -> (i32, i32) {
    %c0_i32 = arith.constant 0 : i32
    %c0_i32_0 = arith.constant 0 : i32
    return %arg0, %c0_i32 : i32, i32
  }
}

</mosaic_0001>

<bundles_post_ra>
// kernel: tpu_custom_call.1
= control target key start
LH: loop header
LB: loop body
LE: loop exit
PB: predicated region body
PF: predicated region fallthrough
CT: control target
= control target key end

     0   :  { %8 = vsyncpa [#allocation3], 0  ;;  %s371_s0 = inlined_call_operand.hbm [shape: f32[16,32], index: 0, kind: input, shape index: {}]   ;;  %s372_s1 = inlined_call_operand.hbm [shape: f32[32,128], index: 1, kind: input, shape index: {}]   ;;  %s373_s2 = inlined_call_operand.hbm [shape: f32[4,128], index: 2, kind: input, shape index: {}]   ;;  %s374_s3 = inlined_call_operand.hbm [shape: f32[16,128], index: 3, kind: output, shape index: {}]  }
   0x1   :  { %9 = vsyncpa [#allocation6], 0 }
   0x2   :  { %10 = vsyncpa [#allocation4], 0  ;;  %s322_s12 = smov [#allocation5]   ;;  %s323_s14 = smov [#allocation2]  }
   0x3   :  { %s28_s13 = sshll.u32 %s322_s12, 4  ;;  %s16_s15 = sshll.u32 %s323_s14, 4  ;;  %s29_s13 = int_to_ptr.vmem [resolvable:$true] %s28_s13  ;;  %s17_s15 = int_to_ptr.vmem [resolvable:$true] %s16_s15 }
   0x4   :  { %s244_s16 = scalar_lea.vmem %s29_s13, 512  ;;  %p249_p1 = scmp.lt.s32.totalorder %s29_s13, %s29_s13 }
   0x5   :  { %p245_p0 = scmp.ne.s32.totalorder %s29_s13, %s244_s16  ;;  %p250_p2 = scmp.lt.s32.totalorder %s244_s16, %s244_s16 }
   0x7   :  { %p251_p3 = por %p250_p2, %p249_p1 }
   0x9   :  { %p252_p4 = pnand %p251_p3, %p245_p0 }
   0xb   :  { %255 = shalt.err (!%p252_p4)
}
   0xc   :  { %s324_s17 = smov 128   ;;  %s325_s18 = smov 8  }
   0xd   :  { %34 = dma.hbm_to_vmem [thread:$0]  %s372_s1, 512, %s29_s13, [#allocation6], %s324_s17, %s324_s17, %s325_s18  }
   0xe   :  { %s264_s21 = scalar_lea.vmem %s17_s15, 256  ;;  %p269_p6 = scmp.lt.s32.totalorder %s17_s15, %s17_s15 }
   0xf   :  { %p265_p5 = scmp.ne.s32.totalorder %s17_s15, %s264_s21  ;;  %p270_p7 = scmp.lt.s32.totalorder %s264_s21, %s264_s21 }
  0x11   :  { %p271_p8 = por %p270_p7, %p269_p6 }
  0x13   :  { %p272_p9 = pnand %p271_p8, %p265_p5 }
  0x15   :  { %275 = shalt.err (!%p272_p9)
}
  0x16   :  { %22 = dma.hbm_to_vmem [thread:$0]  %s371_s0, 256, %s17_s15, [#allocation3], %s324_s17, %s324_s17, %s325_s18  }
  0x17   :  { %s326_s24 = smov [#allocation7]  }
  0x18   :  { %s41_s25 = sshll.u32 %s326_s24, 4  ;;  %s42_s25 = int_to_ptr.vmem [resolvable:$true] %s41_s25 }
  0x19   :  { %s284_s26 = scalar_lea.vmem %s42_s25, 64  ;;  %p289_p11 = scmp.lt.s32.totalorder %s42_s25, %s42_s25 }
  0x1a   :  { %p285_p10 = scmp.ne.s32.totalorder %s42_s25, %s284_s26  ;;  %p290_p12 = scmp.lt.s32.totalorder %s284_s26, %s284_s26 }
  0x1c   :  { %p291_p13 = por %p290_p12, %p289_p11 }
  0x1e   :  { %p292_p0 = pnand %p291_p13, %p285_p10 }
  0x20   :  { %295 = shalt.err (!%p292_p0)
}
  0x21   :  { %44 = dma.hbm_to_vmem [thread:$0]  %s373_s2, 64, %s42_s25, [#allocation6]  }
  0x22   :  { %316 = dma.done.wait [#allocation3], 256  }
  0x23   :  { %317 = vsyncadd [#allocation3], 4294967040 }
  0x24   :  { %318 = dma.done.wait [#allocation6], 576  }
  0x25   :  { %319 = vsyncadd [#allocation6], 4294966720  ;;  %vm65_vm0 = vcmask 261120   ;;  %v60_v0 = vld [vmem:[#allocation5 + $0x18] sm:$0xff]  ;;  %v59_v1 = vld [vmem:[#allocation5 + $0x10] sm:$0xff]  ;;  %v61_v6 = vlaneseq  ;;  %s327_s0 = smov [#allocation8]  }
  0x26   :  { %215 = vmatprep.subr.mxu0 %v60_v0  ;;  %v55_v2 = vld [vmem:[#allocation2] sm:$0xff]  ;;  %v58_v3 = vld [vmem:[#allocation5 + $0x8] sm:$0xff]  ;;  %v57_v4 = vld [vmem:[#allocation5] sm:$0xff]  ;;  %s194_s2 = sshll.u32 %s327_s0, 4  ;;  %s195_s2 = int_to_ptr.vmem [resolvable:$true] %s194_s2 }
  0x27   :  { %216 = vmatpush3.msra.mxu0 %v60_v0  ;;  %223 = vmatprep.mubr.msk.f32.mxu0 %vm65_vm0, %v55_v2  ;;  %v56_v5 = vld [vmem:[#allocation2 + $0x8] sm:$0xff]  ;;  %v62_v7 = vshrl.u32 %v61_v6, 7  ;;  %v54_v9 = vld [vmem:[#allocation7] sm:$0xf]  ;;  %s296_s28 = scalar_lea.vmem %s195_s2, 256  ;;  %p301_p2 = scmp.lt.s32.totalorder %s195_s2, %s195_s2 }
  0x28   :  { %217 = vmatprep.subr.mxu0 %v59_v1  ;;  %p297_p1 = scmp.ne.s32.totalorder %s195_s2, %s296_s28  ;;  %p302_p3 = scmp.lt.s32.totalorder %s296_s28, %s296_s28 }
  0x29   :  { %218 = vmatpush3.msra.mxu0 %v59_v1  ;;  %v63_v8 = vsub.s32 0, %v62_v7  ;;  %v157_v15 = vsub.s32 3, %v62_v7  ;;  %v177_v33 = vsub.s32 1, %v62_v7  ;;  %v183_v34 = vsub.s32 2, %v62_v7 }
  0x2a   :  { %219 = vmatprep.subr.mxu0 %v58_v3  ;;  %p303_p4 = por %p302_p3, %p301_p2 }
  0x2b   :  { %220 = vmatpush3.msra.mxu0 %v58_v3  ;;  %v64_v11 = vrot.slane %v54_v9, %v63_v8  ;;  %v158_v18 = vrot.slane %v54_v9, %v157_v15  ;;  %v178_v35 = vrot.slane %v54_v9, %v177_v33  ;;  %v184_v38 = vrot.slane %v54_v9, %v183_v34 }
  0x2c   :  { %221 = vmatprep.subr.mxu0 %v57_v4  ;;  %p304_p5 = pnand %p303_p4, %p297_p1 }
  0x2d   :  { %222 = vmatpush3.msra.mxu0 %v57_v4 }
  0x2e   :  { %224 = vmatmul.mubr.msk.f32.vlgmr.msra.gmra.mxu0 %vm65_vm0, %v56_v5 }
  0xee   :  { %v225_v10 = vpop.f32.mrf.mxu0 }
  0xef   :  { %v144_v14 = vadd.f32 %v225_v10, %v64_v11 }
  0xf0   :  { %v138_v12 = vpop.f32.mrf.mxu0 }
  0xf1   :  { %v139_v13 = vadd.f32 %v138_v12, %v64_v11 }
  0xf3   :  { %147 = vadd.xlane.f32.xlu0 %v139_v13 }
  0xf7   :  { %149 = vadd.xlane.f32.xlu0 %v144_v14 }
 0x17c   :  { %v148_v16 = vpop.xlane.xlu0 %147 }
 0x17d   :  { %v151_v17 = vmul.f32 0.015625, %v148_v16 }
 0x17f   :  { %v153_v19 = vsub.f32 %v139_v13, %v151_v17 }
 0x180   :  { %v150_v20 = vpop.xlane.xlu0 %149 }
 0x181   :  { %v152_v21 = vmul.f32 0.015625, %v150_v20  ;;  %v159_v22 = vmul.f32 %v158_v18, %v153_v19 }
 0x183   :  { %v154_v23 = vsub.f32 %v144_v14, %v152_v21  ;;  %v161_v24 = vmul.f32 %v159_v22, %v159_v22 }
 0x185   :  { %163 = vadd.xlane.f32.xlu1 %v161_v24  ;;  %v160_v25 = vmul.f32 %v158_v18, %v154_v23 }
 0x187   :  { %v162_v26 = vmul.f32 %v160_v25, %v160_v25 }
 0x189   :  { %165 = vadd.xlane.f32.xlu1 %v162_v26 }
 0x20e   :  { %v164_v27 = vpop.xlane.xlu1 %163 }
 0x20f   :  { %v167_v28 = vmul.f32 0.015625, %v164_v27 }
 0x211   :  { %v169_v29 = vadd.f32 1e-12, %v167_v28 }
 0x212   :  { %v166_v30 = vpop.xlane.xlu1 %165 }
 0x213   :  { %232 = vrsqrt.f32 %v169_v29  ;;  %v168_v31 = vmul.f32 0.015625, %v166_v30 }
 0x215   :  { %v170_v32 = vadd.f32 1e-12, %v168_v31 }
 0x217   :  { %234 = vrsqrt.f32 %v170_v32 }
 0x220   :  { %v233_v36 = vpop.eup %232 }
 0x221   :  { %v173_v37 = vmul.f32 %v233_v36, %v159_v22 }
 0x223   :  { %v179_v39 = vmul.f32 %v178_v35, %v173_v37 }
 0x224   :  { %v235_v40 = vpop.eup %234 }
 0x225   :  { %v174_v41 = vmul.f32 %v235_v40, %v160_v25  ;;  %v185_v42 = vadd.f32 %v184_v38, %v179_v39 }
 0x227   :  { %v180_v43 = vmul.f32 %v178_v35, %v174_v41  ;;  %187 = vst [vmem:[#allocation8] sm:$0xff] %v185_v42 }
 0x229   :  { %v186_v44 = vadd.f32 %v184_v38, %v180_v43 }
 0x22b   :  { %188 = vst [vmem:[#allocation8 + $0x8] sm:$0xff] %v186_v44 }
 0x22c   :  { %307 = shalt.err (!%p304_p5)
}
 0x22d   :  { %200 = dma.vmem_to_hbm [thread:$0]  %s195_s2, 256, %s374_s3, [#allocation4], %s324_s17, %s324_s17, %s325_s18  }
 0x22e   :  { %320 = dma.done.wait [#allocation4], 256  }
 0x22f   :  { %321 = vsyncadd [#allocation4], 4294967040 }
 0x230   :  { %204 = vsyncpa [#allocation3], 1 }
 0x231   :  { %205 = vsyncpa [#allocation6], 1 }
 0x232   :  { %206 = vsyncpa [#allocation4], 1 }

</bundles_post_ra>
